<compile_context>
chip_gen: v6e
topology: v6e:2x2x1
jax: 0.10.0
libtpu: 0.0.40
codegen_flags: <defaults>
</compile_context>

<pallas_src>
import functools

import jax
import jax.numpy as jnp
from jax.experimental import pallas as pl
from jax.experimental.pallas import tpu as pltpu


def vae_kernel(
    x_ref, eps_ref,
    we1_ref, be1_ref, we2_ref, be2_ref,
    wh_ref, bh_ref,                    # fused [mean | logvar] head: (H, 2L), (1, 2L)
    wd1_ref, bd1_ref, wd2_ref, bd2_ref,
    wx_ref, bx_ref,
    out_ref,                           # packed (TILE_N, D + 3L): [rec | mean | logvar | z]
    *, num_latent,
):
    x = x_ref[...]
    eps = eps_ref[...]
    L = num_latent

    # ---- Encoder MLP (Linear+ReLU, Linear+ReLU) ----
    h = jnp.dot(x, we1_ref[...], preferred_element_type=jnp.float32) + be1_ref[...]
    h = jnp.maximum(h, 0.0)
    h = jnp.dot(h, we2_ref[...], preferred_element_type=jnp.float32) + be2_ref[...]
    h = jnp.maximum(h, 0.0)

    # ---- Fused mean / logvar heads: one MXU pass for both ----
    heads = jnp.dot(h, wh_ref[...], preferred_element_type=jnp.float32) + bh_ref[...]
    mean = heads[:, :L]
    logvar = jnp.clip(heads[:, L:], -6.0, 1.0)     # Hardtanh(min=-6, max=1)

    # ---- Reparameterize ----
    z = mean + eps * jnp.exp(0.5 * logvar)

    # ---- Decoder MLP (lik='mse') ----
    g = jnp.dot(z, wd1_ref[...], preferred_element_type=jnp.float32) + bd1_ref[...]
    g = jnp.maximum(g, 0.0)
    g = jnp.dot(g, wd2_ref[...], preferred_element_type=jnp.float32) + bd2_ref[...]
    g = jnp.maximum(g, 0.0)
    rec = jnp.dot(g, wx_ref[...], preferred_element_type=jnp.float32) + bx_ref[...]

    # ---- Single packed output slab (one dense output array / DMA per tile) ----
    D = rec.shape[-1]
    out_ref[:, :D] = rec
    out_ref[:, D:D + L] = mean
    out_ref[:, D + L:D + 2 * L] = logvar
    out_ref[:, D + 2 * L:] = z


def vae_forward(x, eps, params, *, tile_n=None):
    """x: (N, num_inputs), eps: (N, num_latent), params: flat list of 14 arrays
    (PyTorch Linear weights stored transposed as (in, out); biases as (1, out))."""
    we1, be1, we2, be2, wm, bm, wlv, blv, wd1, bd1, wd2, bd2, wx, bx = params
    N, D = x.shape
    L = eps.shape[1]
    H = we1.shape[1]

    # Fuse the two tiny head matmuls into one (H, 2L) weight / (1, 2L) bias.
    wh = jnp.concatenate([wm, wlv], axis=1)
    bh = jnp.concatenate([bm, blv], axis=1)

    # Batch tiling: big tiles amortize per-grid-step overhead; pad N to a multiple.
    if tile_n is None:
        tile_n = 512 if N >= 512 else max(8, -(-N // 8) * 8)
    n_pad = -(-N // tile_n) * tile_n
    if n_pad != N:
        x = jnp.pad(x, ((0, n_pad - N), (0, 0)))
        eps = jnp.pad(eps, ((0, n_pad - N), (0, 0)))
    grid = (n_pad // tile_n,)

    weights = (we1, be1, we2, be2, wh, bh, wd1, bd1, wd2, bd2, wx, bx)

    def row_spec(cols):
        return pl.BlockSpec((tile_n, cols), lambda i: (i, 0))

    def resident(a):  # whole array, same block every step -> stays VMEM-resident
        return pl.BlockSpec(a.shape, lambda i: (0, 0))

    in_specs = [row_spec(D), row_spec(L)] + [resident(w) for w in weights]

    out_cols = D + 3 * L
    out_specs = pl.BlockSpec((tile_n, out_cols), lambda i: (i, 0))
    out_shape = jax.ShapeDtypeStruct((n_pad, out_cols), jnp.float32)

    # Advisory cost estimate so XLA overlaps surrounding ops with the custom call.
    weight_elems = sum(int(w.size) for w in weights)
    flops = 2 * n_pad * (D * H + H * H + H * 2 * L + L * H + H * H + H * D)
    cost = pl.CostEstimate(
        flops=flops,
        transcendentals=n_pad * L,
        bytes_accessed=4 * (n_pad * (D + L + out_cols) + weight_elems),
    )

    # VMEM budget: double-buffered activation tiles + resident weights + headroom,
    # clamped to a window that is safe on v7x's 64 MiB VMEM.
    act_bytes = 4 * tile_n * (D + L + out_cols + 4 * H)
    vmem_est = 4 * act_bytes + 2 * 4 * weight_elems
    vmem_limit = int(min(max(vmem_est, 32 * 2**20), 48 * 2**20))

    # TODO(synk): for non-toy H, cast dot inputs to bf16 (keep f32 accumulate) on v6e/v7x.
    packed = pl.pallas_call(
        functools.partial(vae_kernel, num_latent=L),
        out_shape=out_shape,
        grid=grid,
        in_specs=in_specs,
        out_specs=out_specs,
        compiler_params=pltpu.CompilerParams(
            dimension_semantics=("parallel",),
            vmem_limit_bytes=vmem_limit,
        ),
        cost_estimate=cost,
    )(x, eps, *weights)

    packed = packed[:N]
    rec = packed[:, :D]
    mean = packed[:, D:D + L]
    logvar = packed[:, D + L:D + 2 * L]
    z = packed[:, D + 2 * L:]
    return rec, mean, logvar, z


def init_params(key, num_inputs, num_latent, num_hidden):
    """Deterministic init. Weights stored as (in, out); biases as (1, out)."""
    def linear(k, fan_in, fan_out):
        kw, kb = jax.random.split(k)
        bound = 1.0 / jnp.sqrt(fan_in)
        w = jax.random.uniform(kw, (fan_in, fan_out), jnp.float32, -bound, bound)
        b = jax.random.uniform(kb, (1, fan_out), jnp.float32, -bound, bound)
        return w, b

    keys = jax.random.split(key, 7)
    we1, be1 = linear(keys[0], num_inputs, num_hidden)   # encoder in
    we2, be2 = linear(keys[1], num_hidden, num_hidden)   # encoder hidden
    wm, bm = linear(keys[2], num_hidden, num_latent)     # mean head
    wlv, blv = linear(keys[3], num_hidden, num_latent)   # logvar head
    wd1, bd1 = linear(keys[4], num_latent, num_hidden)   # decoder in
    wd2, bd2 = linear(keys[5], num_hidden, num_hidden)   # decoder hidden
    wx, bx = linear(keys[6], num_hidden, num_inputs)     # rec head (lik='mse')
    return [we1, be1, we2, be2, wm, bm, wlv, blv, wd1, bd1, wd2, bd2, wx, bx]


def vae_reference(x, eps, p):
    """Pure-JAX reference of the same forward pass."""
    we1, be1, we2, be2, wm, bm, wlv, blv, wd1, bd1, wd2, bd2, wx, bx = p
    h = jnp.maximum(x @ we1 + be1, 0.0)
    h = jnp.maximum(h @ we2 + be2, 0.0)
    mean = h @ wm + bm
    logvar = jnp.clip(h @ wlv + blv, -6.0, 1.0)
    z = mean + eps * jnp.exp(0.5 * logvar)
    g = jnp.maximum(z @ wd1 + bd1, 0.0)
    g = jnp.maximum(g @ wd2 + bd2, 0.0)
    rec = g @ wx + bx
    return rec, mean, logvar, z


if __name__ == "__main__":
    # Small, module-consistent shapes: batch=8, num_inputs=2, num_latent=2, num_hidden=32.
    N, NUM_INPUTS, NUM_LATENT, NUM_HIDDEN = 8, 2, 2, 32

    key = jax.random.PRNGKey(0)
    kx, keps, kp = jax.random.split(key, 3)
    x = jax.random.normal(kx, (N, NUM_INPUTS), jnp.float32)
    # eps plays the role of torch.randn_like in reparameterize (generated outside the
    # kernel so the run is deterministic).
    eps = jax.random.normal(keps, (N, NUM_LATENT), jnp.float32)
    params = init_params(kp, NUM_INPUTS, NUM_LATENT, NUM_HIDDEN)

    rec, mean, logvar, z = jax.block_until_ready(vae_forward(x, eps, params))

    # Sanity check vs pure-JAX reference.
    rec_r, mean_r, logvar_r, z_r = vae_reference(x, eps, params)
    for a, b in ((rec, rec_r), (mean, mean_r), (logvar, logvar_r), (z, z_r)):
        assert jnp.allclose(a, b, atol=1e-5, rtol=1e-5), "mismatch vs reference"

    print("KERNEL_OK")
</pallas_src>

<mosaic_0001>
module attributes {stable_mosaic.version = 11 : i64} {
  func.func @vae_kernel(%arg0: i32, %arg1: memref<8x2xf32, #tpu.memory_space<vmem>>, %arg2: memref<8x2xf32, #tpu.memory_space<vmem>>, %arg3: memref<2x32xf32, #tpu.memory_space<vmem>>, %arg4: memref<1x32xf32, #tpu.memory_space<vmem>>, %arg5: memref<32x32xf32, #tpu.memory_space<vmem>>, %arg6: memref<1x32xf32, #tpu.memory_space<vmem>>, %arg7: memref<32x4xf32, #tpu.memory_space<vmem>>, %arg8: memref<1x4xf32, #tpu.memory_space<vmem>>, %arg9: memref<2x32xf32, #tpu.memory_space<vmem>>, %arg10: memref<1x32xf32, #tpu.memory_space<vmem>>, %arg11: memref<32x32xf32, #tpu.memory_space<vmem>>, %arg12: memref<1x32xf32, #tpu.memory_space<vmem>>, %arg13: memref<32x2xf32, #tpu.memory_space<vmem>>, %arg14: memref<1x2xf32, #tpu.memory_space<vmem>>, %arg15: memref<8x8xf32, #tpu.memory_space<vmem>>) attributes {dimension_semantics = [#tpu.dimension_semantics<parallel>], iteration_bounds = array<i64: 1>, scalar_prefetch = 0 : i64, scratch_operands = 0 : i64, tpu.core_type = #tpu.core_type<tc>, window_params = [{transform_indices = @transform_0, window_bounds = array<i64: 8, 2>}, {transform_indices = @transform_1, window_bounds = array<i64: 8, 2>}, {pipeline_mode = #tpu.pipeline_mode<synchronous>, transform_indices = @transform_2, window_bounds = array<i64: 2, 32>}, {pipeline_mode = #tpu.pipeline_mode<synchronous>, transform_indices = @transform_3, window_bounds = array<i64: 1, 32>}, {pipeline_mode = #tpu.pipeline_mode<synchronous>, transform_indices = @transform_4, window_bounds = array<i64: 32, 32>}, {pipeline_mode = #tpu.pipeline_mode<synchronous>, transform_indices = @transform_5, window_bounds = array<i64: 1, 32>}, {pipeline_mode = #tpu.pipeline_mode<synchronous>, transform_indices = @transform_6, window_bounds = array<i64: 32, 4>}, {pipeline_mode = #tpu.pipeline_mode<synchronous>, transform_indices = @transform_7, window_bounds = array<i64: 1, 4>}, {pipeline_mode = #tpu.pipeline_mode<synchronous>, transform_indices = @transform_8, window_bounds = array<i64: 2, 32>}, {pipeline_mode = #tpu.pipeline_mode<synchronous>, transform_indices = @transform_9, window_bounds = array<i64: 1, 32>}, {pipeline_mode = #tpu.pipeline_mode<synchronous>, transform_indices = @transform_10, window_bounds = array<i64: 32, 32>}, {pipeline_mode = #tpu.pipeline_mode<synchronous>, transform_indices = @transform_11, window_bounds = array<i64: 1, 32>}, {pipeline_mode = #tpu.pipeline_mode<synchronous>, transform_indices = @transform_12, window_bounds = array<i64: 32, 2>}, {pipeline_mode = #tpu.pipeline_mode<synchronous>, transform_indices = @transform_13, window_bounds = array<i64: 1, 2>}, {transform_indices = @transform_14, window_bounds = array<i64: 8, 8>}]} {
    %c0 = arith.constant 0 : index
    %c0_0 = arith.constant 0 : index
    %0 = vector.load %arg1[%c0, %c0_0] : memref<8x2xf32, #tpu.memory_space<vmem>>, vector<8x2xf32>
    %c0_1 = arith.constant 0 : index
    %c0_2 = arith.constant 0 : index
    %1 = vector.load %arg2[%c0_1, %c0_2] : memref<8x2xf32, #tpu.memory_space<vmem>>, vector<8x2xf32>
    %c0_3 = arith.constant 0 : index
    %c0_4 = arith.constant 0 : index
    %2 = vector.load %arg3[%c0_3, %c0_4] : memref<2x32xf32, #tpu.memory_space<vmem>>, vector<2x32xf32>
    %cst = arith.constant dense<0.000000e+00> : vector<8x32xf32>
    %3 = tpu.matmul %0, %2, %cst {dimension_numbers = #tpu.dot_dimension_numbers<[1], [0], [0], [1], [0, 0, 1, 1], [], []>} : vector<8x2xf32>, vector<2x32xf32>, vector<8x32xf32> -> vector<8x32xf32>
    %c0_5 = arith.constant 0 : index
    %c0_6 = arith.constant 0 : index
    %4 = vector.load %arg4[%c0_5, %c0_6] : memref<1x32xf32, #tpu.memory_space<vmem>>, vector<1x32xf32>
    %5 = vector.broadcast %4 : vector<1x32xf32> to vector<8x32xf32>
    %6 = arith.addf %3, %5 : vector<8x32xf32>
    %cst_7 = arith.constant 0.000000e+00 : f32
    %7 = vector.broadcast %cst_7 : f32 to vector<8x32xf32>
    %8 = arith.maximumf %6, %7 : vector<8x32xf32>
    %c0_8 = arith.constant 0 : index
    %c0_9 = arith.constant 0 : index
    %9 = vector.load %arg5[%c0_8, %c0_9] : memref<32x32xf32, #tpu.memory_space<vmem>>, vector<32x32xf32>
    %cst_10 = arith.constant dense<0.000000e+00> : vector<8x32xf32>
    %10 = tpu.matmul %8, %9, %cst_10 {dimension_numbers = #tpu.dot_dimension_numbers<[1], [0], [0], [1], [0, 0, 1, 1], [], []>} : vector<8x32xf32>, vector<32x32xf32>, vector<8x32xf32> -> vector<8x32xf32>
    %c0_11 = arith.constant 0 : index
    %c0_12 = arith.constant 0 : index
    %11 = vector.load %arg6[%c0_11, %c0_12] : memref<1x32xf32, #tpu.memory_space<vmem>>, vector<1x32xf32>
    %12 = vector.broadcast %11 : vector<1x32xf32> to vector<8x32xf32>
    %13 = arith.addf %10, %12 : vector<8x32xf32>
    %cst_13 = arith.constant 0.000000e+00 : f32
    %14 = vector.broadcast %cst_13 : f32 to vector<8x32xf32>
    %15 = arith.maximumf %13, %14 : vector<8x32xf32>
    %c0_14 = arith.constant 0 : index
    %c0_15 = arith.constant 0 : index
    %16 = vector.load %arg7[%c0_14, %c0_15] : memref<32x4xf32, #tpu.memory_space<vmem>>, vector<32x4xf32>
    %cst_16 = arith.constant dense<0.000000e+00> : vector<8x4xf32>
    %17 = tpu.matmul %15, %16, %cst_16 {dimension_numbers = #tpu.dot_dimension_numbers<[1], [0], [0], [1], [0, 0, 1, 1], [], []>} : vector<8x32xf32>, vector<32x4xf32>, vector<8x4xf32> -> vector<8x4xf32>
    %c0_17 = arith.constant 0 : index
    %c0_18 = arith.constant 0 : index
    %18 = vector.load %arg8[%c0_17, %c0_18] : memref<1x4xf32, #tpu.memory_space<vmem>>, vector<1x4xf32>
    %19 = vector.broadcast %18 : vector<1x4xf32> to vector<8x4xf32>
    %20 = arith.addf %17, %19 : vector<8x4xf32>
    %21 = vector.extract_strided_slice %20 {offsets = [0, 0], sizes = [8, 2], strides = [1, 1]} : vector<8x4xf32> to vector<8x2xf32>
    %22 = vector.extract_strided_slice %20 {offsets = [0, 2], sizes = [8, 2], strides = [1, 1]} : vector<8x4xf32> to vector<8x2xf32>
    %cst_19 = arith.constant -6.000000e+00 : f32
    %cst_20 = arith.constant 1.000000e+00 : f32
    %23 = vector.broadcast %cst_19 : f32 to vector<8x2xf32>
    %24 = arith.maximumf %23, %22 : vector<8x2xf32>
    %25 = vector.broadcast %cst_20 : f32 to vector<8x2xf32>
    %26 = arith.minimumf %25, %24 : vector<8x2xf32>
    %cst_21 = arith.constant 5.000000e-01 : f32
    %27 = vector.broadcast %cst_21 : f32 to vector<8x2xf32>
    %28 = arith.mulf %27, %26 : vector<8x2xf32>
    %29 = math.exp %28 : vector<8x2xf32>
    %30 = arith.mulf %1, %29 : vector<8x2xf32>
    %31 = arith.addf %21, %30 : vector<8x2xf32>
    %c0_22 = arith.constant 0 : index
    %c0_23 = arith.constant 0 : index
    %32 = vector.load %arg9[%c0_22, %c0_23] : memref<2x32xf32, #tpu.memory_space<vmem>>, vector<2x32xf32>
    %cst_24 = arith.constant dense<0.000000e+00> : vector<8x32xf32>
    %33 = tpu.matmul %31, %32, %cst_24 {dimension_numbers = #tpu.dot_dimension_numbers<[1], [0], [0], [1], [0, 0, 1, 1], [], []>} : vector<8x2xf32>, vector<2x32xf32>, vector<8x32xf32> -> vector<8x32xf32>
    %c0_25 = arith.constant 0 : index
    %c0_26 = arith.constant 0 : index
    %34 = vector.load %arg10[%c0_25, %c0_26] : memref<1x32xf32, #tpu.memory_space<vmem>>, vector<1x32xf32>
    %35 = vector.broadcast %34 : vector<1x32xf32> to vector<8x32xf32>
    %36 = arith.addf %33, %35 : vector<8x32xf32>
    %cst_27 = arith.constant 0.000000e+00 : f32
    %37 = vector.broadcast %cst_27 : f32 to vector<8x32xf32>
    %38 = arith.maximumf %36, %37 : vector<8x32xf32>
    %c0_28 = arith.constant 0 : index
    %c0_29 = arith.constant 0 : index
    %39 = vector.load %arg11[%c0_28, %c0_29] : memref<32x32xf32, #tpu.memory_space<vmem>>, vector<32x32xf32>
    %cst_30 = arith.constant dense<0.000000e+00> : vector<8x32xf32>
    %40 = tpu.matmul %38, %39, %cst_30 {dimension_numbers = #tpu.dot_dimension_numbers<[1], [0], [0], [1], [0, 0, 1, 1], [], []>} : vector<8x32xf32>, vector<32x32xf32>, vector<8x32xf32> -> vector<8x32xf32>
    %c0_31 = arith.constant 0 : index
    %c0_32 = arith.constant 0 : index
    %41 = vector.load %arg12[%c0_31, %c0_32] : memref<1x32xf32, #tpu.memory_space<vmem>>, vector<1x32xf32>
    %42 = vector.broadcast %41 : vector<1x32xf32> to vector<8x32xf32>
    %43 = arith.addf %40, %42 : vector<8x32xf32>
    %cst_33 = arith.constant 0.000000e+00 : f32
    %44 = vector.broadcast %cst_33 : f32 to vector<8x32xf32>
    %45 = arith.maximumf %43, %44 : vector<8x32xf32>
    %c0_34 = arith.constant 0 : index
    %c0_35 = arith.constant 0 : index
    %46 = vector.load %arg13[%c0_34, %c0_35] : memref<32x2xf32, #tpu.memory_space<vmem>>, vector<32x2xf32>
    %cst_36 = arith.constant dense<0.000000e+00> : vector<8x2xf32>
    %47 = tpu.matmul %45, %46, %cst_36 {dimension_numbers = #tpu.dot_dimension_numbers<[1], [0], [0], [1], [0, 0, 1, 1], [], []>} : vector<8x32xf32>, vector<32x2xf32>, vector<8x2xf32> -> vector<8x2xf32>
    %c0_37 = arith.constant 0 : index
    %c0_38 = arith.constant 0 : index
    %48 = vector.load %arg14[%c0_37, %c0_38] : memref<1x2xf32, #tpu.memory_space<vmem>>, vector<1x2xf32>
    %49 = vector.broadcast %48 : vector<1x2xf32> to vector<8x2xf32>
    %50 = arith.addf %47, %49 : vector<8x2xf32>
    %c0_39 = arith.constant 0 : index
    %c0_40 = arith.constant 0 : index
    %51 = vector.load %arg15[%c0_39, %c0_40] : memref<8x8xf32, #tpu.memory_space<vmem>>, vector<8x2xf32>
    tpu.vector_store %arg15[%c0_39, %c0_40], %50 {strides = array<i32>} : memref<8x8xf32, #tpu.memory_space<vmem>>, vector<8x2xf32>,
    %c0_41 = arith.constant 0 : index
    %c2 = arith.constant 2 : index
    %52 = vector.load %arg15[%c0_41, %c2] : memref<8x8xf32, #tpu.memory_space<vmem>>, vector<8x2xf32>
    tpu.vector_store %arg15[%c0_41, %c2], %21 {strides = array<i32>} : memref<8x8xf32, #tpu.memory_space<vmem>>, vector<8x2xf32>,
    %c0_42 = arith.constant 0 : index
    %c4 = arith.constant 4 : index
    %53 = vector.load %arg15[%c0_42, %c4] : memref<8x8xf32, #tpu.memory_space<vmem>>, vector<8x2xf32>
    tpu.vector_store %arg15[%c0_42, %c4], %26 {strides = array<i32>} : memref<8x8xf32, #tpu.memory_space<vmem>>, vector<8x2xf32>,
    %c0_43 = arith.constant 0 : index
    %c6 = arith.constant 6 : index
    %54 = vector.load %arg15[%c0_43, %c6] : memref<8x8xf32, #tpu.memory_space<vmem>>, vector<8x2xf32>
    tpu.vector_store %arg15[%c0_43, %c6], %31 {strides = array<i32>} : memref<8x8xf32, #tpu.memory_space<vmem>>, vector<8x2xf32>,
    return
  }
  func.func @transform_0(%arg0: i32) -> (i32, i32) {
    %c0_i32 = arith.constant 0 : i32
    %c0_i32_0 = arith.constant 0 : i32
    return %arg0, %c0_i32 : i32, i32
  }
  func.func @transform_1(%arg0: i32) -> (i32, i32) {
    %c0_i32 = arith.constant 0 : i32
    %c0_i32_0 = arith.constant 0 : i32
    return %arg0, %c0_i32 : i32, i32
  }
  func.func @transform_2(%arg0: i32) -> (i32, i32) {
    %c0_i32 = arith.constant 0 : i32
    %c0_i32_0 = arith.constant 0 : i32
    %c0_i32_1 = arith.constant 0 : i32
    return %c0_i32, %c0_i32_0 : i32, i32
  }
  func.func @transform_3(%arg0: i32) -> (i32, i32) {
    %c0_i32 = arith.constant 0 : i32
    %c0_i32_0 = arith.constant 0 : i32
    %c0_i32_1 = arith.constant 0 : i32
    return %c0_i32, %c0_i32_0 : i32, i32
  }
  func.func @transform_4(%arg0: i32) -> (i32, i32) {
    %c0_i32 = arith.constant 0 : i32
    %c0_i32_0 = arith.constant 0 : i32
    %c0_i32_1 = arith.constant 0 : i32
    return %c0_i32, %c0_i32_0 : i32, i32
  }
  func.func @transform_5(%arg0: i32) -> (i32, i32) {
    %c0_i32 = arith.constant 0 : i32
    %c0_i32_0 = arith.constant 0 : i32
    %c0_i32_1 = arith.constant 0 : i32
    return %c0_i32, %c0_i32_0 : i32, i32
  }
  func.func @transform_6(%arg0: i32) -> (i32, i32) {
    %c0_i32 = arith.constant 0 : i32
    %c0_i32_0 = arith.constant 0 : i32
    %c0_i32_1 = arith.constant 0 : i32
    return %c0_i32, %c0_i32_0 : i32, i32
  }
  func.func @transform_7(%arg0: i32) -> (i32, i32) {
    %c0_i32 = arith.constant 0 : i32
    %c0_i32_0 = arith.constant 0 : i32
    %c0_i32_1 = arith.constant 0 : i32
    return %c0_i32, %c0_i32_0 : i32, i32
  }
  func.func @transform_8(%arg0: i32) -> (i32, i32) {
    %c0_i32 = arith.constant 0 : i32
    %c0_i32_0 = arith.constant 0 : i32
    %c0_i32_1 = arith.constant 0 : i32
    return %c0_i32, %c0_i32_0 : i32, i32
  }
  func.func @transform_9(%arg0: i32) -> (i32, i32) {
    %c0_i32 = arith.constant 0 : i32
    %c0_i32_0 = arith.constant 0 : i32
    %c0_i32_1 = arith.constant 0 : i32
    return %c0_i32, %c0_i32_0 : i32, i32
  }
  func.func @transform_10(%arg0: i32) -> (i32, i32) {
    %c0_i32 = arith.constant 0 : i32
    %c0_i32_0 = arith.constant 0 : i32
    %c0_i32_1 = arith.constant 0 : i32
    return %c0_i32, %c0_i32_0 : i32, i32
  }
  func.func @transform_11(%arg0: i32) -> (i32, i32) {
    %c0_i32 = arith.constant 0 : i32
    %c0_i32_0 = arith.constant 0 : i32
    %c0_i32_1 = arith.constant 0 : i32
    return %c0_i32, %c0_i32_0 : i32, i32
  }
  func.func @transform_12(%arg0: i32) -> (i32, i32) {
    %c0_i32 = arith.constant 0 : i32
    %c0_i32_0 = arith.constant 0 : i32
    %c0_i32_1 = arith.constant 0 : i32
    return %c0_i32, %c0_i32_0 : i32, i32
  }
  func.func @transform_13(%arg0: i32) -> (i32, i32) {
    %c0_i32 = arith.constant 0 : i32
    %c0_i32_0 = arith.constant 0 : i32
    %c0_i32_1 = arith.constant 0 : i32
    return %c0_i32, %c0_i32_0 : i32, i32
  }
  func.func @transform_14(%arg0: i32) -> (i32, i32) {
    %c0_i32 = arith.constant 0 : i32
    %c0_i32_0 = arith.constant 0 : i32
    return %arg0, %c0_i32 : i32, i32
  }
}

</mosaic_0001>

<bundles_post_ra>
// kernel: tpu_custom_call.1
= control target key start
LH: loop header
LB: loop body
LE: loop exit
PB: predicated region body
PF: predicated region fallthrough
CT: control target
= control target key end

     0   :  { %vm62_vm0 = vcmask 1041408   ;;  %v726_v2 = vmov 0.0   ;;  %vm727_vm1 = vmmov 0   ;;  %vm58_vm2 = vcmask 15360   ;;  %s927_s0 = inlined_call_operand.vmem [shape: f32[8,2], index: 0, kind: input, shape index: {}]   ;;  %s928_s1 = inlined_call_operand.vmem [shape: f32[8,2], index: 1, kind: input, shape index: {}]   ;;  %s929_s2 = inlined_call_operand.vmem [shape: f32[2,32], index: 2, kind: input, shape index: {}]   ;;  %s930_s3 = inlined_call_operand.vmem [shape: f32[1,32], index: 3, kind: input, shape index: {}]   ;;  %s931_s4 = inlined_call_operand.vmem [shape: f32[32,32], index: 4, kind: input, shape index: {}]   ;;  %s932_s5 = inlined_call_operand.vmem [shape: f32[1,32], index: 5, kind: input, shape index: {}]   ;;  %s933_s6 = inlined_call_operand.vmem [shape: f32[32,4], index: 6, kind: input, shape index: {}]   ;;  %s934_s7 = inlined_call_operand.vmem [shape: f32[1,4], index: 7, kind: input, shape index: {}]   ;;  %s935_s8 = inlined_call_operand.vmem [shape: f32[2,32], index: 8, kind: input, shape index: {}]   ;;  %s936_s9 = inlined_call_operand.vmem [shape: f32[1,32], index: 9, kind: input, shape index: {}]   ;;  %s937_s10 = inlined_call_operand.vmem [shape: f32[32,32], index: 10, kind: input, shape index: {}]   ;;  %s938_s11 = inlined_call_operand.vmem [shape: f32[1,32], index: 11, kind: input, shape index: {}]   ;;  %s939_s12 = inlined_call_operand.vmem [shape: f32[32,2], index: 12, kind: input, shape index: {}]   ;;  %s940_s13 = inlined_call_operand.vmem [shape: f32[1,2], index: 13, kind: input, shape index: {}]   ;;  %s941_s14 = inlined_call_operand.hbm [shape: f32[8,8], index: 14, kind: output, shape index: {}]  }
   0x1   :  { %v50_v0 = vld [vmem:[%s929_s2] sm:$0x3]  ;;  %642 = vmatprep.subr.mxu0 %v726_v2  ;;  %644 = vmatprep.mubr.msk.f32.mxu0 %vm727_vm1, %v726_v2  ;;  %v140_v3 = vld [vmem:[%s931_s4 + $0x18] sm:$0xff] }
   0x2   :  { %v48_v1 = vld [vmem:[%s927_s0] sm:$0xff] }
   0x3   :  { %19 = vsyncpa [#allocation3], 0  ;;  %643 = vmatpush3.msk.msra.mxu0 %vm62_vm0, %v50_v0  ;;  %647 = vmatprep.subr.mxu1 %v726_v2  ;;  %v139_v4 = vld [vmem:[%s931_s4 + $0x10] sm:$0xff]  ;;  %v138_v5 = vld [vmem:[%s931_s4 + $0x8] sm:$0xff]  ;;  %vm148_vm3 = vcmask 261120   ;;  %vm577_vm4 = vcmask 31760  }
   0x4   :  { %645 = vmatmul.mubr.msk.f32.vlgmr.msra.gmra.mxu0 %vm58_vm2, %v48_v1  ;;  %648 = vmatpush3.msra.mxu1 %v140_v3  ;;  %v137_v6 = vld [vmem:[%s931_s4] sm:$0xff]  ;;  %v226_v7 = vld [vmem:[%s933_s6 + $0x18] sm:$0xff]  ;;  %v225_v13 = vld [vmem:[%s933_s6 + $0x10] sm:$0xff]  ;;  %vm583_vm5 = vcmask 48160   ;;  %vm588_vm6 = vcmask 64560  }
   0x5   :  { %649 = vmatprep.subr.mxu1 %v726_v2  ;;  %655 = vmatprep.mubr.msk.f32.mxu1 %vm727_vm1, %v726_v2  ;;  %v604_v8 = vld [vmem:[%s930_s3] ss:$0 sm:$0xff]  ;;  %v224_v14 = vld [vmem:[%s933_s6 + $0x8] sm:$0xff]  ;;  %v406_v31 = vld [vmem:[%s937_s10 + $0x18] sm:$0xff] }
   0x6   :  { %658 = vmatprep.subr.mxu0 %v726_v2  ;;  %666 = vmatprep.mubr.msk.f32.mxu0 %vm727_vm1, %v726_v2  ;;  %v223_v15 = vld [vmem:[%s933_s6] sm:$0xff]  ;;  %s728_s6 = smov 2   ;;  %v405_v36 = vld [vmem:[%s937_s10 + $0x10] sm:$0xff]  ;;  %v404_v37 = vld [vmem:[%s937_s10 + $0x8] sm:$0xff] }
   0x7   :  { %650 = vmatpush3.msra.mxu1 %v139_v4  ;;  %659 = vmatpush3.msra.mxu0 %v226_v7  ;;  %v607_v16 = vld [vmem:[%s932_s5] ss:$0 sm:$0xff]  ;;  %v491_v39 = vld [vmem:[%s939_s12 + $0x18] sm:$0xff]  ;;  %v490_v45 = vld [vmem:[%s939_s12 + $0x10] sm:$0xff] }
   0x8   :  { %651 = vmatprep.subr.mxu1 %v726_v2  ;;  %660 = vmatprep.subr.mxu0 %v726_v2  ;;  %v609_v21 = vld [vmem:[%s934_s7] ss:$0 sm:$0xff]  ;;  %s729_s7 = smov 126   ;;  %v489_v46 = vld [vmem:[%s939_s12 + $0x8] sm:$0xff] }
   0x9   :  { %652 = vmatpush3.msra.mxu1 %v138_v5  ;;  %661 = vmatpush3.msra.mxu0 %v225_v13  ;;  %v318_v29 = vld [vmem:[%s935_s8] sm:$0x3]  ;;  %s730_s8 = smov 6  }
   0xa   :  { %653 = vmatprep.subr.mxu1 %v726_v2  ;;  %662 = vmatprep.subr.mxu0 %v726_v2  ;;  %v49_v32 = vld [vmem:[%s928_s1] sm:$0xff] }
   0xb   :  { %654 = vmatpush3.msra.mxu1 %v137_v6  ;;  %663 = vmatpush3.msra.mxu0 %v224_v14  ;;  %v403_v38 = vld [vmem:[%s937_s10] sm:$0xff] }
   0xc   :  { %669 = vmatprep.subr.mxu1 %v726_v2  ;;  %664 = vmatprep.subr.mxu0 %v726_v2  ;;  %v611_v40 = vld [vmem:[%s936_s9] ss:$0 sm:$0xff] }
   0xd   :  { %665 = vmatpush3.msra.mxu0 %v223_v15  ;;  %v488_v47 = vld [vmem:[%s939_s12] sm:$0xff]  ;;  %s731_s12 = smov [#allocation2]  }
   0xe   :  { %674 = vmatprep.subr.mxu0 %v726_v2  ;;  %v614_v48 = vld [vmem:[%s938_s11] ss:$0 sm:$0xff]  ;;  %s596_s0 = sshll.u32 %s731_s12, 4  ;;  %s597_s0 = int_to_ptr.vmem [resolvable:$true] %s596_s0 }
   0xf   :  { %v616_v53 = vld [vmem:[%s940_s13] ss:$0 sm:$0xff]  ;;  %s704_s11 = scalar_lea.vmem %s597_s0, 128  ;;  %p709_p1 = scmp.lt.s32.totalorder %s597_s0, %s597_s0 }
  0x10   :  { %p705_p0 = scmp.ne.s32.totalorder %s597_s0, %s704_s11  ;;  %p710_p2 = scmp.lt.s32.totalorder %s704_s11, %s704_s11 }
  0x12   :  { %p711_p3 = por %p710_p2, %p709_p1 }
  0x14   :  { %p712_p4 = pnand %p711_p3, %p705_p0 }
  0xc4   :  { %v132_v9 = vpop.f32.mrf.mxu0 }
  0xc5   :  { %v133_v10 = vadd.f32 %v604_v8, %v132_v9 }
  0xc6   :  { %v646_v11 = vpop.f32.mrf.mxu0 }
  0xc7   :  { %v136_v12 = vmax.f32 %v133_v10, 0.0 }
  0xc9   :  { %656 = vmatmul.mubr.msk.f32.vlgmr.msra.gmra.mxu1 %vm148_vm3, %v136_v12 }
  0xca   :  { %671 = vmatprep.mubr.msk.f32.mxu1 %vm727_vm1, %v726_v2  ;;  %670 = vmatpush3.msk.msra.mxu1 %vm62_vm0, %v318_v29 }
  0xcb   :  { %685 = vmatprep.subr.mxu1 %v726_v2 }
 0x189   :  { %v218_v17 = vpop.f32.mrf.mxu1 }
 0x18a   :  { %v219_v18 = vadd.f32 %v607_v16, %v218_v17 }
 0x18b   :  { %v657_v19 = vpop.f32.mrf.mxu1 }
 0x18c   :  { %v222_v20 = vmax.f32 %v219_v18, 0.0 }
 0x18e   :  { %667 = vmatmul.mubr.msk.f32.vlgmr.msra.gmra.mxu0 %vm148_vm3, %v222_v20 }
 0x18f   :  { %682 = vmatprep.mubr.msk.f32.mxu0 %vm727_vm1, %v726_v2  ;;  %675 = vmatpush3.msra.mxu0 %v406_v31 }
 0x190   :  { %676 = vmatprep.subr.mxu0 %v726_v2 }
 0x191   :  { %677 = vmatpush3.msra.mxu0 %v405_v36 }
 0x192   :  { %678 = vmatprep.subr.mxu0 %v726_v2 }
 0x193   :  { %679 = vmatpush3.msra.mxu0 %v404_v37 }
 0x194   :  { %680 = vmatprep.subr.mxu0 %v726_v2 }
 0x195   :  { %681 = vmatpush3.msra.mxu0 %v403_v38 }
 0x24e   :  { %v303_v22 = vpop.f32.mrf.mxu0 }
 0x24f   :  { %v304_v23 = vadd.f32 %v609_v21, %v303_v22 }
 0x250   :  { %v668_v24 = vpop.f32.mrf.mxu0 }
 0x251   :  { %v307_v25 = vmax.f32 %v304_v23, -6.0 }
 0x253   :  { %v308_v26 = vmin.f32 %v307_v25, 1.0 }
 0x255   :  { %580 = vrot.lane.b32.xlu1 %v308_v26, %s728_s6  ;;  %v309_v27 = vmul.f32 0.5, %v308_v26 }
 0x257   :  { %v310_v28 = vmul.f32 1.442695, %v309_v27 }
 0x259   :  { %702 = vpow2.f32 %v310_v28 }
 0x266   :  { %v703_v30 = vpop.eup %702 }
 0x267   :  { %313 = vrot.lane.b32.xlu0 %v703_v30, %s729_s7 }
 0x26b   :  { %574 = vrot.lane.b32.xlu0 %v304_v23, %s728_s6 }
 0x2c7   :  { %v581_v55 = vpop.permute.xlu1 %580 }
 0x2d9   :  { %v314_v33 = vpop.permute.xlu0 %313 }
 0x2da   :  { %v316_v34 = vmul.f32 %v314_v33, %v49_v32 }
 0x2dc   :  { %v317_v35 = vadd.f32 %v316_v34, %v304_v23 }
 0x2dd   :  { %v575_v58 = vpop.permute.xlu0 %574 }
 0x2de   :  { %585 = vrot.lane.b32.xlu1 %v317_v35, %s730_s8  ;;  %672 = vmatmul.mubr.msk.f32.vlgmr.msra.gmra.mxu1 %vm58_vm2, %v317_v35 }
 0x2df   :  { %693 = vmatprep.mubr.msk.f32.mxu1 %vm727_vm1, %v726_v2  ;;  %686 = vmatpush3.msra.mxu1 %v491_v39 }
 0x2e0   :  { %687 = vmatprep.subr.mxu1 %v726_v2 }
 0x2e1   :  { %688 = vmatpush3.msra.mxu1 %v490_v45 }
 0x2e2   :  { %689 = vmatprep.subr.mxu1 %v726_v2 }
 0x2e3   :  { %690 = vmatpush3.msra.mxu1 %v489_v46 }
 0x2e4   :  { %691 = vmatprep.subr.mxu1 %v726_v2 }
 0x2e5   :  { %692 = vmatpush3.msra.mxu1 %v488_v47 }
 0x350   :  { %v586_v59 = vpop.permute.xlu1 %585 }
 0x39e   :  { %v398_v41 = vpop.f32.mrf.mxu1 }
 0x39f   :  { %v399_v42 = vadd.f32 %v611_v40, %v398_v41 }
 0x3a0   :  { %v673_v43 = vpop.f32.mrf.mxu1 }
 0x3a1   :  { %v402_v44 = vmax.f32 %v399_v42, 0.0 }
 0x3a3   :  { %683 = vmatmul.mubr.msk.f32.vlgmr.msra.gmra.mxu0 %vm148_vm3, %v402_v44 }
 0x463   :  { %v483_v49 = vpop.f32.mrf.mxu0 }
 0x464   :  { %v484_v50 = vadd.f32 %v614_v48, %v483_v49 }
 0x465   :  { %v684_v51 = vpop.f32.mrf.mxu0 }
 0x466   :  { %v487_v52 = vmax.f32 %v484_v50, 0.0 }
 0x468   :  { %694 = vmatmul.mubr.msk.f32.vlgmr.msra.gmra.mxu1 %vm148_vm3, %v487_v52 }
 0x528   :  { %v568_v54 = vpop.f32.mrf.mxu1 }
 0x529   :  { %v569_v56 = vadd.f32 %v616_v53, %v568_v54 }
 0x52a   :  { %v695_v57 = vpop.f32.mrf.mxu1 }
 0x52b   :  { %572 = vst.msk [vmem:[#allocation2] sm:$0xff] %vm58_vm2, %v569_v56 }
 0x52c   :  { %578 = vst.msk [vmem:[#allocation2] sm:$0xff] %vm577_vm4, %v575_v58 }
 0x52d   :  { %584 = vst.msk [vmem:[#allocation2] sm:$0xff] %vm583_vm5, %v581_v55 }
 0x52e   :  { %589 = vst.msk [vmem:[#allocation2] sm:$0xff] %vm588_vm6, %v586_v59 }
 0x52f   :  { %715 = shalt.err (!%p712_p4)
}
 0x530   :  { %599 = dma.vmem_to_hbm [thread:$0]  %s597_s0, 128, %s941_s14, [#allocation3]  }
 0x531   :  { %724 = dma.done.wait [#allocation3], 128  }
 0x532   :  { %725 = vsyncadd [#allocation3], 4294967168 }
 0x533   :  { %603 = vsyncpa [#allocation3], 1 }

</bundles_post_ra>
